<compile_context>
chip_gen: v7x
topology: tpu7x:2x2x1
jax: 0.10.0
libtpu: 0.0.40
codegen_flags: <defaults>
</compile_context>

<pallas_src>
import numpy as np
import jax
import jax.numpy as jnp
from jax.experimental import pallas as pl
from jax.experimental.pallas import tpu as pltpu


_TILE_M = 2048                    # node-dim tile for large levels (multiple of 8)
_VMEM_LIMIT = 32 * 1024 * 1024    # explicit scoped-VMEM limit (safe on v5e/v6e/v7x)
_STORE_DTYPE = jnp.bfloat16       # storage dtype for prepass outputs + tree state


def _compiler_params():
    return pltpu.CompilerParams(dimension_semantics=("parallel",),
                                vmem_limit_bytes=_VMEM_LIMIT)


def _tile(m):
    """Node-dim tile: >=2 blocks whenever m >= 16 (v7x has 2 TensorCores),
    capped at _TILE_M, always a multiple of 8 (or the full dim when tiny)."""
    if m < 16:
        return m
    half = -(-m // 2)                       # ceil(m / 2)
    half8 = ((half + 7) // 8) * 8           # round up to multiple of 8
    return min(_TILE_M, half8)


# ----------------------------------------------------------------------------
# Pallas kernels
# ----------------------------------------------------------------------------

def prepass_kernel(x_ref, w_ref, b_ref, pre_ref, st_ref):
    """All-nodes feature matmul + fused leaf-level gate nonlinearities.

    x_ref   : [TN, F_in]  node features (f32)
    w_ref   : [F_in, 4H]  [W_iou^T | W_f^T] (f32)
    b_ref   : [1, 4H]     [b_iou | b_f] (f32)
    pre_ref : [TN, 4H]    bf16 out, [W_iou(x)+b_iou | W_f(x)+b_f]
    st_ref  : [TN, 2H]    bf16 out, leaf-level [c | h] for every node
    """
    H = b_ref.shape[-1] // 4
    pre = jnp.dot(x_ref[...], w_ref[...],
                  preferred_element_type=jnp.float32) + b_ref[...]
    pre_ref[...] = pre.astype(pre_ref.dtype)

    i_g = jax.nn.sigmoid(pre[:, :H])
    o_g = jax.nn.sigmoid(pre[:, H:2 * H])
    u_g = jnp.tanh(pre[:, 2 * H:3 * H])
    c0 = i_g * u_g
    h0 = o_g * jnp.tanh(c0)
    st_ref[...] = jnp.concatenate([c0, h0], axis=-1).astype(st_ref.dtype)


def internal_kernel(wioux_ref, wfxp_ref, chh_ref, chc_ref,
                    u_ref, wc_ref, bc_ref, o_ref):
    """One internal level (iteration n > 0).

    wioux_ref : [TM, 3H]  bf16  W_iou(x)+b_iou rows of evaluated nodes
    wfxp_ref  : [TM, H]   bf16  W_f(features[parent])+b_f (one row per node)
    chh_ref   : [TM, 3H]  bf16  child h, merged per child slot
    chc_ref   : [TM, 3H]  bf16  child c, merged per child slot
    u_ref     : [3H, 6H]  bf16  [U_iou^T | blockdiag(U_f^T, U_f^T, U_f^T)]
    wc_ref    : [3H, H]   bf16  W_c^T          bc_ref : [1, H] f32
    o_ref     : [TM, 2H]  bf16  output [c | h]
    """
    H3 = wioux_ref.shape[-1]
    H = H3 // 3

    chh = chh_ref[...]
    # Single 192-lane MXU pass: [iou pre-act | f pre-act], f32 accumulation.
    uif = jnp.dot(chh, u_ref[...], preferred_element_type=jnp.float32)   # [TM, 6H]

    iou = wioux_ref[...].astype(jnp.float32) + uif[:, :H3]
    wfxp = wfxp_ref[...].astype(jnp.float32)                              # [TM, H]
    f = jax.nn.sigmoid(jnp.concatenate([wfxp, wfxp, wfxp], axis=-1) + uif[:, H3:])

    fc = f * chc_ref[...].astype(jnp.float32)
    c_red = jnp.dot(fc.astype(wc_ref.dtype), wc_ref[...],
                    preferred_element_type=jnp.float32) + bc_ref[...]

    i_g = jax.nn.sigmoid(iou[:, :H])
    o_g = jax.nn.sigmoid(iou[:, H:2 * H])
    u_g = jnp.tanh(iou[:, 2 * H:])

    c_new = i_g * u_g + c_red
    h_new = o_g * jnp.tanh(c_new)
    o_ref[...] = jnp.concatenate([c_new, h_new], axis=-1).astype(o_ref.dtype)


# ----------------------------------------------------------------------------
# pallas_call wrappers
# ----------------------------------------------------------------------------

def prepass(features, w_cat, b_cat):
    N, F = features.shape
    H4 = w_cat.shape[1]
    H = H4 // 4
    tn = _tile(N)
    return pl.pallas_call(
        prepass_kernel,
        out_shape=(jax.ShapeDtypeStruct((N, H4), _STORE_DTYPE),
                   jax.ShapeDtypeStruct((N, 2 * H), _STORE_DTYPE)),
        grid=(pl.cdiv(N, tn),),
        in_specs=[pl.BlockSpec((tn, F), lambda i: (i, 0)),
                  pl.BlockSpec((F, H4), lambda i: (0, 0)),
                  pl.BlockSpec((1, H4), lambda i: (0, 0))],
        out_specs=(pl.BlockSpec((tn, H4), lambda i: (i, 0)),
                   pl.BlockSpec((tn, 2 * H), lambda i: (i, 0))),
        compiler_params=_compiler_params(),
    )(features, w_cat, b_cat)


def internal_step(wioux_g, wfx_p, chh, chc, u_cat, wc_t, bc):
    M, H3 = wioux_g.shape
    H = H3 // 3
    tm = _tile(M)
    return pl.pallas_call(
        internal_kernel,
        out_shape=jax.ShapeDtypeStruct((M, 2 * H), _STORE_DTYPE),
        grid=(pl.cdiv(M, tm),),
        in_specs=[pl.BlockSpec((tm, H3), lambda i: (i, 0)),
                  pl.BlockSpec((tm, H), lambda i: (i, 0)),
                  pl.BlockSpec((tm, H3), lambda i: (i, 0)),
                  pl.BlockSpec((tm, H3), lambda i: (i, 0)),
                  pl.BlockSpec((H3, 2 * H3), lambda i: (0, 0)),
                  pl.BlockSpec((H3, H), lambda i: (0, 0)),
                  pl.BlockSpec((1, H), lambda i: (0, 0))],
        out_specs=pl.BlockSpec((tm, 2 * H), lambda i: (i, 0)),
        compiler_params=_compiler_params(),
    )(wioux_g, wfx_p, chh, chc, u_cat, wc_t, bc)


# ----------------------------------------------------------------------------
# Jitted forward over all levels (gathers / scatter fused by XLA around the kernels)
# ----------------------------------------------------------------------------

@jax.jit
def _forward_impl(forest_f, w_cat, b_cat, u_cat, wc_t, bc, levels):
    H = bc.shape[-1]
    # One lane-dense matmul over ALL nodes + fused leaf-level state init.
    pre, state = prepass(forest_f, w_cat, b_cat)      # [N, 4H] bf16, [N, 2H] bf16
    wioux_all = pre[:, :3 * H]                        # W_iou(x) + b_iou
    wfx_all = pre[:, 3 * H:]                          # W_f(x)   + b_f

    for node_idx, parent0_idx, child_idx in levels:
        M = node_idx.shape[0]
        wioux_g = jnp.take(wioux_all, node_idx, axis=0)          # [M, 3H]
        wfx_p = jnp.take(wfx_all, parent0_idx, axis=0)           # [M, H]
        ch = jnp.take(state, child_idx, axis=0).reshape(M, 3, 2 * H)
        chc = ch[:, :, :H].reshape(M, 3 * H)                     # [M, 3H]
        chh = ch[:, :, H:].reshape(M, 3 * H)                     # [M, 3H]

        out = internal_step(wioux_g, wfx_p, chh, chc, u_cat, wc_t, bc)  # [M, 2H]
        state = state.at[node_idx].set(out)

    return state[:, H:].astype(jnp.float32)                      # h


# ----------------------------------------------------------------------------
# TreeLSTM forward (host-side tree bookkeeping + weight prep glue)
# ----------------------------------------------------------------------------

def tree_lstm_forward(forest, adjacency, node_order, edge_order, params):
    W_iou = np.asarray(params["W_iou"], np.float32)
    H = W_iou.shape[0] // 3
    F_in = W_iou.shape[1]

    # flatten(0, 2) equivalents
    forest_f = jnp.asarray(forest, jnp.float32).reshape(-1, F_in)
    adj_np = np.asarray(adjacency).reshape(-1, 2)
    node_order_np = np.asarray(node_order).reshape(-1)
    edge_order_np = np.asarray(edge_order).reshape(-1)

    # Per-level node / parent / child index arrays (host bookkeeping, done once).
    levels = []
    for n in range(1, int(node_order_np.max()) + 1):
        node_idx = np.nonzero(node_order_np == n)[0].astype(np.int32)
        edges = adj_np[np.nonzero(edge_order_np == n)[0]]
        assert edges.shape[0] == 3 * node_idx.shape[0], "expect 3 children per node"
        parent0_idx = edges[0::3, 0].astype(np.int32)   # one parent row per node
        child_idx = edges[:, 1].astype(np.int32)
        levels.append((jnp.asarray(node_idx), jnp.asarray(parent0_idx),
                       jnp.asarray(child_idx)))
    levels = tuple(levels)

    # Weight prep (done once).
    w_cat = jnp.concatenate([jnp.asarray(params["W_iou"], jnp.float32).T,
                             jnp.asarray(params["W_f"], jnp.float32).T], axis=1)  # [F_in, 4H]
    b_cat = jnp.concatenate([jnp.asarray(params["b_iou"], jnp.float32),
                             jnp.asarray(params["b_f"], jnp.float32)]).reshape(1, 4 * H)
    u_cat = jnp.concatenate(
        [jnp.asarray(params["U_iou"], jnp.float32).T,
         jnp.kron(jnp.eye(3, dtype=jnp.float32),
                  jnp.asarray(params["U_f"], jnp.float32).T)],
        axis=1).astype(_STORE_DTYPE)                                               # [3H, 6H]
    wc_t = jnp.asarray(params["W_c"], jnp.float32).T.astype(_STORE_DTYPE)          # [3H, H]
    bc = jnp.asarray(params["b_c"], jnp.float32).reshape(1, H)

    return _forward_impl(forest_f, w_cat, b_cat, u_cat, wc_t, bc, levels)


# ----------------------------------------------------------------------------
# Pure numpy reference (mirrors the PyTorch module exactly, f32)
# ----------------------------------------------------------------------------

def _sigmoid(x):
    return 1.0 / (1.0 + np.exp(-x))


def reference_forward(forest, adjacency, node_order, edge_order, params):
    W_iou = params["W_iou"]; b_iou = params["b_iou"]; U_iou = params["U_iou"]
    W_c = params["W_c"]; b_c = params["b_c"]
    W_f = params["W_f"]; b_f = params["b_f"]; U_f = params["U_f"]
    H = W_f.shape[0]
    F_in = W_iou.shape[1]

    forest = np.asarray(forest, np.float32).reshape(-1, F_in)
    adjacency_list = np.asarray(adjacency).reshape(-1, 2)
    node_order = np.asarray(node_order).reshape(-1)
    edge_order = np.asarray(edge_order).reshape(-1)
    N = node_order.shape[0]

    h = np.zeros((N, H), np.float32)
    c = np.zeros((N, H), np.float32)

    for n in range(int(node_order.max()) + 1):
        node_mask = node_order == n
        edge_mask = edge_order == n
        x = forest[node_mask, :]
        if n == 0:
            iou = x @ W_iou.T + b_iou
        else:
            adj = adjacency_list[edge_mask, :]
            parent_indexes = adj[:, 0]
            child_indexes = adj[:, 1]
            child_h = h[child_indexes, :]
            child_c = c[child_indexes, :]
            i_dims = child_h.shape[0] // 3
            child_h_merge = child_h.reshape(i_dims, 3 * H)
            iou = x @ W_iou.T + b_iou + child_h_merge @ U_iou.T
        i, o, u = np.split(iou, 3, axis=1)
        i = _sigmoid(i); o = _sigmoid(o); u = np.tanh(u)
        if n == 0:
            c[node_mask, :] = i * u
        else:
            f = forest[parent_indexes, :] @ W_f.T + b_f + child_h @ U_f.T
            f = _sigmoid(f)
            fc = f * child_c
            fc = fc.reshape(fc.shape[0] // 3, 3 * H)
            c_reduce = fc @ W_c.T + b_c
            c[node_mask, :] = i * u + c_reduce
        h[node_mask, :] = o * np.tanh(c[node_mask])
    return h


# ----------------------------------------------------------------------------
# Deterministic parameter init and synthetic forest construction
# ----------------------------------------------------------------------------

def init_params(key, in_features, out_features):
    H = out_features
    keys = jax.random.split(key, 8)

    def uniform(k, shape, fan_in):
        bound = 1.0 / np.sqrt(fan_in)
        return jax.random.uniform(k, shape, jnp.float32, -bound, bound)

    return dict(
        W_iou=uniform(keys[0], (3 * H, in_features), in_features),
        b_iou=uniform(keys[1], (3 * H,), in_features),
        U_iou=uniform(keys[2], (3 * H, 3 * H), 3 * H),
        W_c=uniform(keys[3], (H, 3 * H), 3 * H),
        b_c=uniform(keys[4], (H,), 3 * H),
        W_f=uniform(keys[5], (H, in_features), in_features),
        b_f=uniform(keys[6], (H,), in_features),
        U_f=uniform(keys[7], (H, H), H),
    )


def build_forest(num_trees, in_features, key):
    """Perfect ternary trees of depth 2: 13 nodes, 12 edges each.

    node 0 = root (order 2), nodes 1..3 = internal (order 1), nodes 4..12 = leaves (order 0).
    Edge list groups the 3 children of each parent consecutively, parents in node-index order.
    """
    nodes_per_tree, edges_per_tree = 13, 12
    node_order_tree = np.array([2, 1, 1, 1] + [0] * 9, np.int64)

    adj_tree, edge_order_tree = [], []
    for p in (1, 2, 3):
        for ci in range(3):
            adj_tree.append((p, 4 + 3 * (p - 1) + ci))
            edge_order_tree.append(1)
    for ch in (1, 2, 3):
        adj_tree.append((0, ch))
        edge_order_tree.append(2)
    adj_tree = np.array(adj_tree, np.int64)
    edge_order_tree = np.array(edge_order_tree, np.int64)

    node_order = np.tile(node_order_tree, num_trees).reshape(num_trees, nodes_per_tree, 1)
    adjacency = np.stack([adj_tree + t * nodes_per_tree for t in range(num_trees)]
                         ).reshape(num_trees, edges_per_tree, 1, 2)
    edge_order = np.tile(edge_order_tree, num_trees).reshape(num_trees, edges_per_tree, 1)
    forest = jax.random.normal(key, (num_trees, nodes_per_tree, 1, in_features), jnp.float32)
    return forest, adjacency, node_order, edge_order


# ----------------------------------------------------------------------------

if __name__ == "__main__":
    key = jax.random.PRNGKey(0)
    k_forest, k_params = jax.random.split(key)

    in_features, out_features = 16, 32
    num_trees = 2

    forest, adjacency, node_order, edge_order = build_forest(num_trees, in_features, k_forest)
    params = init_params(k_params, in_features, out_features)

    h = tree_lstm_forward(forest, adjacency, node_order, edge_order, params)
    h = jax.block_until_ready(h)

    h_ref = reference_forward(np.asarray(forest), adjacency, node_order, edge_order,
                              {k: np.asarray(v) for k, v in params.items()})

    assert h.shape == (num_trees * 13 * 1, out_features)
    # bf16 storage of prepass outputs / state (f32 accumulation) => relaxed tolerance.
    np.testing.assert_allclose(np.asarray(h), h_ref, atol=2e-2, rtol=2e-2)
    print("KERNEL_OK")
</pallas_src>

<mosaic_0001>
module attributes {stable_mosaic.version = 11 : i64} {
  func.func @prepass_kernel(%arg0: i32, %arg1: memref<16x16xf32, #tpu.memory_space<vmem>>, %arg2: memref<16x128xf32, #tpu.memory_space<vmem>>, %arg3: memref<1x128xf32, #tpu.memory_space<vmem>>, %arg4: memref<16x128xbf16, #tpu.memory_space<vmem>>, %arg5: memref<16x64xbf16, #tpu.memory_space<vmem>>) attributes {dimension_semantics = [#tpu.dimension_semantics<parallel>], iteration_bounds = array<i64: 2>, scalar_prefetch = 0 : i64, scratch_operands = 0 : i64, tpu.core_type = #tpu.core_type<tc>, window_params = [{transform_indices = @transform_0, window_bounds = array<i64: 16, 16>}, {pipeline_mode = #tpu.pipeline_mode<synchronous>, transform_indices = @transform_1, window_bounds = array<i64: 16, 128>}, {pipeline_mode = #tpu.pipeline_mode<synchronous>, transform_indices = @transform_2, window_bounds = array<i64: 1, 128>}, {transform_indices = @transform_3, window_bounds = array<i64: 16, 128>}, {transform_indices = @transform_4, window_bounds = array<i64: 16, 64>}]} {
    %c0 = arith.constant 0 : index
    %c0_0 = arith.constant 0 : index
    %0 = vector.load %arg1[%c0, %c0_0] : memref<16x16xf32, #tpu.memory_space<vmem>>, vector<16x16xf32>
    %c0_1 = arith.constant 0 : index
    %c0_2 = arith.constant 0 : index
    %1 = vector.load %arg2[%c0_1, %c0_2] : memref<16x128xf32, #tpu.memory_space<vmem>>, vector<16x128xf32>
    %cst = arith.constant dense<0.000000e+00> : vector<16x128xf32>
    %2 = tpu.matmul %0, %1, %cst {dimension_numbers = #tpu.dot_dimension_numbers<[1], [0], [0], [1], [0, 0, 1, 1], [], []>} : vector<16x16xf32>, vector<16x128xf32>, vector<16x128xf32> -> vector<16x128xf32>
    %c0_3 = arith.constant 0 : index
    %c0_4 = arith.constant 0 : index
    %3 = vector.load %arg3[%c0_3, %c0_4] : memref<1x128xf32, #tpu.memory_space<vmem>>, vector<1x128xf32>
    %4 = vector.broadcast %3 : vector<1x128xf32> to vector<16x128xf32>
    %5 = arith.addf %2, %4 : vector<16x128xf32>
    %6 = arith.truncf %5 : vector<16x128xf32> to vector<16x128xbf16>
    %c0_5 = arith.constant 0 : index
    %c0_6 = arith.constant 0 : index
    %7 = vector.load %arg4[%c0_5, %c0_6] : memref<16x128xbf16, #tpu.memory_space<vmem>>, vector<16x128xbf16>
    tpu.vector_store %arg4[%c0_5, %c0_6], %6 {strides = array<i32>} : memref<16x128xbf16, #tpu.memory_space<vmem>>, vector<16x128xbf16>,
    %8 = vector.extract_strided_slice %5 {offsets = [0, 0], sizes = [16, 32], strides = [1, 1]} : vector<16x128xf32> to vector<16x32xf32>
    %9 = arith.negf %8 : vector<16x32xf32>
    %10 = math.exp %9 : vector<16x32xf32>
    %cst_7 = arith.constant 1.000000e+00 : f32
    %11 = vector.broadcast %cst_7 : f32 to vector<16x32xf32>
    %12 = arith.addf %11, %10 : vector<16x32xf32>
    %13 = arith.divf %11, %12 : vector<16x32xf32>
    %14 = vector.extract_strided_slice %5 {offsets = [0, 32], sizes = [16, 32], strides = [1, 1]} : vector<16x128xf32> to vector<16x32xf32>
    %15 = arith.negf %14 : vector<16x32xf32>
    %16 = math.exp %15 : vector<16x32xf32>
    %cst_8 = arith.constant 1.000000e+00 : f32
    %17 = vector.broadcast %cst_8 : f32 to vector<16x32xf32>
    %18 = arith.addf %17, %16 : vector<16x32xf32>
    %19 = arith.divf %17, %18 : vector<16x32xf32>
    %20 = vector.extract_strided_slice %5 {offsets = [0, 64], sizes = [16, 32], strides = [1, 1]} : vector<16x128xf32> to vector<16x32xf32>
    %21 = math.tanh %20 : vector<16x32xf32>
    %22 = arith.mulf %13, %21 : vector<16x32xf32>
    %23 = math.tanh %22 : vector<16x32xf32>
    %24 = arith.mulf %19, %23 : vector<16x32xf32>
    %25 = tpu.concatenate %22, %24 in 1 : vector<16x32xf32>, vector<16x32xf32> -> vector<16x64xf32>
    %26 = arith.truncf %25 : vector<16x64xf32> to vector<16x64xbf16>
    %c0_9 = arith.constant 0 : index
    %c0_10 = arith.constant 0 : index
    %27 = vector.load %arg5[%c0_9, %c0_10] : memref<16x64xbf16, #tpu.memory_space<vmem>>, vector<16x64xbf16>
    tpu.vector_store %arg5[%c0_9, %c0_10], %26 {strides = array<i32>} : memref<16x64xbf16, #tpu.memory_space<vmem>>, vector<16x64xbf16>,
    return
  }
  func.func @transform_0(%arg0: i32) -> (i32, i32) {
    %c0_i32 = arith.constant 0 : i32
    %c0_i32_0 = arith.constant 0 : i32
    return %arg0, %c0_i32 : i32, i32
  }
  func.func @transform_1(%arg0: i32) -> (i32, i32) {
    %c0_i32 = arith.constant 0 : i32
    %c0_i32_0 = arith.constant 0 : i32
    %c0_i32_1 = arith.constant 0 : i32
    return %c0_i32, %c0_i32_0 : i32, i32
  }
  func.func @transform_2(%arg0: i32) -> (i32, i32) {
    %c0_i32 = arith.constant 0 : i32
    %c0_i32_0 = arith.constant 0 : i32
    %c0_i32_1 = arith.constant 0 : i32
    return %c0_i32, %c0_i32_0 : i32, i32
  }
  func.func @transform_3(%arg0: i32) -> (i32, i32) {
    %c0_i32 = arith.constant 0 : i32
    %c0_i32_0 = arith.constant 0 : i32
    return %arg0, %c0_i32 : i32, i32
  }
  func.func @transform_4(%arg0: i32) -> (i32, i32) {
    %c0_i32 = arith.constant 0 : i32
    %c0_i32_0 = arith.constant 0 : i32
    return %arg0, %c0_i32 : i32, i32
  }
}

module attributes {stable_mosaic.version = 11 : i64} {
  func.func @internal_kernel(%arg0: i32, %arg1: memref<6x96xbf16, #tpu.memory_space<vmem>>, %arg2: memref<6x32xbf16, #tpu.memory_space<vmem>>, %arg3: memref<6x96xbf16, #tpu.memory_space<vmem>>, %arg4: memref<6x96xbf16, #tpu.memory_space<vmem>>, %arg5: memref<96x192xbf16, #tpu.memory_space<vmem>>, %arg6: memref<96x32xbf16, #tpu.memory_space<vmem>>, %arg7: memref<1x32xf32, #tpu.memory_space<vmem>>, %arg8: memref<6x64xbf16, #tpu.memory_space<vmem>>) attributes {dimension_semantics = [#tpu.dimension_semantics<parallel>], iteration_bounds = array<i64: 1>, scalar_prefetch = 0 : i64, scratch_operands = 0 : i64, tpu.core_type = #tpu.core_type<tc>, window_params = [{transform_indices = @transform_0, window_bounds = array<i64: 6, 96>}, {transform_indices = @transform_1, window_bounds = array<i64: 6, 32>}, {transform_indices = @transform_2, window_bounds = array<i64: 6, 96>}, {transform_indices = @transform_3, window_bounds = array<i64: 6, 96>}, {pipeline_mode = #tpu.pipeline_mode<synchronous>, transform_indices = @transform_4, window_bounds = array<i64: 96, 192>}, {pipeline_mode = #tpu.pipeline_mode<synchronous>, transform_indices = @transform_5, window_bounds = array<i64: 96, 32>}, {pipeline_mode = #tpu.pipeline_mode<synchronous>, transform_indices = @transform_6, window_bounds = array<i64: 1, 32>}, {transform_indices = @transform_7, window_bounds = array<i64: 6, 64>}]} {
    %c0 = arith.constant 0 : index
    %c0_0 = arith.constant 0 : index
    %0 = vector.load %arg3[%c0, %c0_0] : memref<6x96xbf16, #tpu.memory_space<vmem>>, vector<6x96xbf16>
    %c0_1 = arith.constant 0 : index
    %c0_2 = arith.constant 0 : index
    %1 = vector.load %arg5[%c0_1, %c0_2] : memref<96x192xbf16, #tpu.memory_space<vmem>>, vector<96x192xbf16>
    %cst = arith.constant dense<0.000000e+00> : vector<6x192xf32>
    %2 = tpu.matmul %0, %1, %cst {dimension_numbers = #tpu.dot_dimension_numbers<[1], [0], [0], [1], [0, 0, 1, 1], [], []>} : vector<6x96xbf16>, vector<96x192xbf16>, vector<6x192xf32> -> vector<6x192xf32>
    %c0_3 = arith.constant 0 : index
    %c0_4 = arith.constant 0 : index
    %3 = vector.load %arg1[%c0_3, %c0_4] : memref<6x96xbf16, #tpu.memory_space<vmem>>, vector<6x96xbf16>
    %4 = arith.extf %3 : vector<6x96xbf16> to vector<6x96xf32>
    %5 = vector.extract_strided_slice %2 {offsets = [0, 0], sizes = [6, 96], strides = [1, 1]} : vector<6x192xf32> to vector<6x96xf32>
    %6 = arith.addf %4, %5 : vector<6x96xf32>
    %c0_5 = arith.constant 0 : index
    %c0_6 = arith.constant 0 : index
    %7 = vector.load %arg2[%c0_5, %c0_6] : memref<6x32xbf16, #tpu.memory_space<vmem>>, vector<6x32xbf16>
    %8 = arith.extf %7 : vector<6x32xbf16> to vector<6x32xf32>
    %9 = tpu.concatenate %8, %8, %8 in 1 : vector<6x32xf32>, vector<6x32xf32>, vector<6x32xf32> -> vector<6x96xf32>
    %10 = vector.extract_strided_slice %2 {offsets = [0, 96], sizes = [6, 96], strides = [1, 1]} : vector<6x192xf32> to vector<6x96xf32>
    %11 = arith.addf %9, %10 : vector<6x96xf32>
    %12 = arith.negf %11 : vector<6x96xf32>
    %13 = math.exp %12 : vector<6x96xf32>
    %cst_7 = arith.constant 1.000000e+00 : f32
    %14 = vector.broadcast %cst_7 : f32 to vector<6x96xf32>
    %15 = arith.addf %14, %13 : vector<6x96xf32>
    %16 = arith.divf %14, %15 : vector<6x96xf32>
    %c0_8 = arith.constant 0 : index
    %c0_9 = arith.constant 0 : index
    %17 = vector.load %arg4[%c0_8, %c0_9] : memref<6x96xbf16, #tpu.memory_space<vmem>>, vector<6x96xbf16>
    %18 = arith.extf %17 : vector<6x96xbf16> to vector<6x96xf32>
    %19 = arith.mulf %16, %18 : vector<6x96xf32>
    %20 = arith.truncf %19 : vector<6x96xf32> to vector<6x96xbf16>
    %c0_10 = arith.constant 0 : index
    %c0_11 = arith.constant 0 : index
    %21 = vector.load %arg6[%c0_10, %c0_11] : memref<96x32xbf16, #tpu.memory_space<vmem>>, vector<96x32xbf16>
    %cst_12 = arith.constant dense<0.000000e+00> : vector<6x32xf32>
    %22 = tpu.matmul %20, %21, %cst_12 {dimension_numbers = #tpu.dot_dimension_numbers<[1], [0], [0], [1], [0, 0, 1, 1], [], []>} : vector<6x96xbf16>, vector<96x32xbf16>, vector<6x32xf32> -> vector<6x32xf32>
    %c0_13 = arith.constant 0 : index
    %c0_14 = arith.constant 0 : index
    %23 = vector.load %arg7[%c0_13, %c0_14] : memref<1x32xf32, #tpu.memory_space<vmem>>, vector<1x32xf32>
    %24 = vector.broadcast %23 : vector<1x32xf32> to vector<6x32xf32>
    %25 = arith.addf %22, %24 : vector<6x32xf32>
    %26 = vector.extract_strided_slice %6 {offsets = [0, 0], sizes = [6, 32], strides = [1, 1]} : vector<6x96xf32> to vector<6x32xf32>
    %27 = arith.negf %26 : vector<6x32xf32>
    %28 = math.exp %27 : vector<6x32xf32>
    %cst_15 = arith.constant 1.000000e+00 : f32
    %29 = vector.broadcast %cst_15 : f32 to vector<6x32xf32>
    %30 = arith.addf %29, %28 : vector<6x32xf32>
    %31 = arith.divf %29, %30 : vector<6x32xf32>
    %32 = vector.extract_strided_slice %6 {offsets = [0, 32], sizes = [6, 32], strides = [1, 1]} : vector<6x96xf32> to vector<6x32xf32>
    %33 = arith.negf %32 : vector<6x32xf32>
    %34 = math.exp %33 : vector<6x32xf32>
    %cst_16 = arith.constant 1.000000e+00 : f32
    %35 = vector.broadcast %cst_16 : f32 to vector<6x32xf32>
    %36 = arith.addf %35, %34 : vector<6x32xf32>
    %37 = arith.divf %35, %36 : vector<6x32xf32>
    %38 = vector.extract_strided_slice %6 {offsets = [0, 64], sizes = [6, 32], strides = [1, 1]} : vector<6x96xf32> to vector<6x32xf32>
    %39 = math.tanh %38 : vector<6x32xf32>
    %40 = arith.mulf %31, %39 : vector<6x32xf32>
    %41 = arith.addf %40, %25 : vector<6x32xf32>
    %42 = math.tanh %41 : vector<6x32xf32>
    %43 = arith.mulf %37, %42 : vector<6x32xf32>
    %44 = tpu.concatenate %41, %43 in 1 : vector<6x32xf32>, vector<6x32xf32> -> vector<6x64xf32>
    %45 = arith.truncf %44 : vector<6x64xf32> to vector<6x64xbf16>
    %c0_17 = arith.constant 0 : index
    %c0_18 = arith.constant 0 : index
    %46 = vector.load %arg8[%c0_17, %c0_18] : memref<6x64xbf16, #tpu.memory_space<vmem>>, vector<6x64xbf16>
    tpu.vector_store %arg8[%c0_17, %c0_18], %45 {strides = array<i32>} : memref<6x64xbf16, #tpu.memory_space<vmem>>, vector<6x64xbf16>,
    return
  }
  func.func @transform_0(%arg0: i32) -> (i32, i32) {
    %c0_i32 = arith.constant 0 : i32
    %c0_i32_0 = arith.constant 0 : i32
    return %arg0, %c0_i32 : i32, i32
  }
  func.func @transform_1(%arg0: i32) -> (i32, i32) {
    %c0_i32 = arith.constant 0 : i32
    %c0_i32_0 = arith.constant 0 : i32
    return %arg0, %c0_i32 : i32, i32
  }
  func.func @transform_2(%arg0: i32) -> (i32, i32) {
    %c0_i32 = arith.constant 0 : i32
    %c0_i32_0 = arith.constant 0 : i32
    return %arg0, %c0_i32 : i32, i32
  }
  func.func @transform_3(%arg0: i32) -> (i32, i32) {
    %c0_i32 = arith.constant 0 : i32
    %c0_i32_0 = arith.constant 0 : i32
    return %arg0, %c0_i32 : i32, i32
  }
  func.func @transform_4(%arg0: i32) -> (i32, i32) {
    %c0_i32 = arith.constant 0 : i32
    %c0_i32_0 = arith.constant 0 : i32
    %c0_i32_1 = arith.constant 0 : i32
    return %c0_i32, %c0_i32_0 : i32, i32
  }
  func.func @transform_5(%arg0: i32) -> (i32, i32) {
    %c0_i32 = arith.constant 0 : i32
    %c0_i32_0 = arith.constant 0 : i32
    %c0_i32_1 = arith.constant 0 : i32
    return %c0_i32, %c0_i32_0 : i32, i32
  }
  func.func @transform_6(%arg0: i32) -> (i32, i32) {
    %c0_i32 = arith.constant 0 : i32
    %c0_i32_0 = arith.constant 0 : i32
    %c0_i32_1 = arith.constant 0 : i32
    return %c0_i32, %c0_i32_0 : i32, i32
  }
  func.func @transform_7(%arg0: i32) -> (i32, i32) {
    %c0_i32 = arith.constant 0 : i32
    %c0_i32_0 = arith.constant 0 : i32
    return %arg0, %c0_i32 : i32, i32
  }
}

module attributes {stable_mosaic.version = 11 : i64} {
  func.func @internal_kernel(%arg0: i32, %arg1: memref<2x96xbf16, #tpu.memory_space<vmem>>, %arg2: memref<2x32xbf16, #tpu.memory_space<vmem>>, %arg3: memref<2x96xbf16, #tpu.memory_space<vmem>>, %arg4: memref<2x96xbf16, #tpu.memory_space<vmem>>, %arg5: memref<96x192xbf16, #tpu.memory_space<vmem>>, %arg6: memref<96x32xbf16, #tpu.memory_space<vmem>>, %arg7: memref<1x32xf32, #tpu.memory_space<vmem>>, %arg8: memref<2x64xbf16, #tpu.memory_space<vmem>>) attributes {dimension_semantics = [#tpu.dimension_semantics<parallel>], iteration_bounds = array<i64: 1>, scalar_prefetch = 0 : i64, scratch_operands = 0 : i64, tpu.core_type = #tpu.core_type<tc>, window_params = [{transform_indices = @transform_0, window_bounds = array<i64: 2, 96>}, {transform_indices = @transform_1, window_bounds = array<i64: 2, 32>}, {transform_indices = @transform_2, window_bounds = array<i64: 2, 96>}, {transform_indices = @transform_3, window_bounds = array<i64: 2, 96>}, {pipeline_mode = #tpu.pipeline_mode<synchronous>, transform_indices = @transform_4, window_bounds = array<i64: 96, 192>}, {pipeline_mode = #tpu.pipeline_mode<synchronous>, transform_indices = @transform_5, window_bounds = array<i64: 96, 32>}, {pipeline_mode = #tpu.pipeline_mode<synchronous>, transform_indices = @transform_6, window_bounds = array<i64: 1, 32>}, {transform_indices = @transform_7, window_bounds = array<i64: 2, 64>}]} {
    %c0 = arith.constant 0 : index
    %c0_0 = arith.constant 0 : index
    %0 = vector.load %arg3[%c0, %c0_0] : memref<2x96xbf16, #tpu.memory_space<vmem>>, vector<2x96xbf16>
    %c0_1 = arith.constant 0 : index
    %c0_2 = arith.constant 0 : index
    %1 = vector.load %arg5[%c0_1, %c0_2] : memref<96x192xbf16, #tpu.memory_space<vmem>>, vector<96x192xbf16>
    %cst = arith.constant dense<0.000000e+00> : vector<2x192xf32>
    %2 = tpu.matmul %0, %1, %cst {dimension_numbers = #tpu.dot_dimension_numbers<[1], [0], [0], [1], [0, 0, 1, 1], [], []>} : vector<2x96xbf16>, vector<96x192xbf16>, vector<2x192xf32> -> vector<2x192xf32>
    %c0_3 = arith.constant 0 : index
    %c0_4 = arith.constant 0 : index
    %3 = vector.load %arg1[%c0_3, %c0_4] : memref<2x96xbf16, #tpu.memory_space<vmem>>, vector<2x96xbf16>
    %4 = arith.extf %3 : vector<2x96xbf16> to vector<2x96xf32>
    %5 = vector.extract_strided_slice %2 {offsets = [0, 0], sizes = [2, 96], strides = [1, 1]} : vector<2x192xf32> to vector<2x96xf32>
    %6 = arith.addf %4, %5 : vector<2x96xf32>
    %c0_5 = arith.constant 0 : index
    %c0_6 = arith.constant 0 : index
    %7 = vector.load %arg2[%c0_5, %c0_6] : memref<2x32xbf16, #tpu.memory_space<vmem>>, vector<2x32xbf16>
    %8 = arith.extf %7 : vector<2x32xbf16> to vector<2x32xf32>
    %9 = tpu.concatenate %8, %8, %8 in 1 : vector<2x32xf32>, vector<2x32xf32>, vector<2x32xf32> -> vector<2x96xf32>
    %10 = vector.extract_strided_slice %2 {offsets = [0, 96], sizes = [2, 96], strides = [1, 1]} : vector<2x192xf32> to vector<2x96xf32>
    %11 = arith.addf %9, %10 : vector<2x96xf32>
    %12 = arith.negf %11 : vector<2x96xf32>
    %13 = math.exp %12 : vector<2x96xf32>
    %cst_7 = arith.constant 1.000000e+00 : f32
    %14 = vector.broadcast %cst_7 : f32 to vector<2x96xf32>
    %15 = arith.addf %14, %13 : vector<2x96xf32>
    %16 = arith.divf %14, %15 : vector<2x96xf32>
    %c0_8 = arith.constant 0 : index
    %c0_9 = arith.constant 0 : index
    %17 = vector.load %arg4[%c0_8, %c0_9] : memref<2x96xbf16, #tpu.memory_space<vmem>>, vector<2x96xbf16>
    %18 = arith.extf %17 : vector<2x96xbf16> to vector<2x96xf32>
    %19 = arith.mulf %16, %18 : vector<2x96xf32>
    %20 = arith.truncf %19 : vector<2x96xf32> to vector<2x96xbf16>
    %c0_10 = arith.constant 0 : index
    %c0_11 = arith.constant 0 : index
    %21 = vector.load %arg6[%c0_10, %c0_11] : memref<96x32xbf16, #tpu.memory_space<vmem>>, vector<96x32xbf16>
    %cst_12 = arith.constant dense<0.000000e+00> : vector<2x32xf32>
    %22 = tpu.matmul %20, %21, %cst_12 {dimension_numbers = #tpu.dot_dimension_numbers<[1], [0], [0], [1], [0, 0, 1, 1], [], []>} : vector<2x96xbf16>, vector<96x32xbf16>, vector<2x32xf32> -> vector<2x32xf32>
    %c0_13 = arith.constant 0 : index
    %c0_14 = arith.constant 0 : index
    %23 = vector.load %arg7[%c0_13, %c0_14] : memref<1x32xf32, #tpu.memory_space<vmem>>, vector<1x32xf32>
    %24 = vector.broadcast %23 : vector<1x32xf32> to vector<2x32xf32>
    %25 = arith.addf %22, %24 : vector<2x32xf32>
    %26 = vector.extract_strided_slice %6 {offsets = [0, 0], sizes = [2, 32], strides = [1, 1]} : vector<2x96xf32> to vector<2x32xf32>
    %27 = arith.negf %26 : vector<2x32xf32>
    %28 = math.exp %27 : vector<2x32xf32>
    %cst_15 = arith.constant 1.000000e+00 : f32
    %29 = vector.broadcast %cst_15 : f32 to vector<2x32xf32>
    %30 = arith.addf %29, %28 : vector<2x32xf32>
    %31 = arith.divf %29, %30 : vector<2x32xf32>
    %32 = vector.extract_strided_slice %6 {offsets = [0, 32], sizes = [2, 32], strides = [1, 1]} : vector<2x96xf32> to vector<2x32xf32>
    %33 = arith.negf %32 : vector<2x32xf32>
    %34 = math.exp %33 : vector<2x32xf32>
    %cst_16 = arith.constant 1.000000e+00 : f32
    %35 = vector.broadcast %cst_16 : f32 to vector<2x32xf32>
    %36 = arith.addf %35, %34 : vector<2x32xf32>
    %37 = arith.divf %35, %36 : vector<2x32xf32>
    %38 = vector.extract_strided_slice %6 {offsets = [0, 64], sizes = [2, 32], strides = [1, 1]} : vector<2x96xf32> to vector<2x32xf32>
    %39 = math.tanh %38 : vector<2x32xf32>
    %40 = arith.mulf %31, %39 : vector<2x32xf32>
    %41 = arith.addf %40, %25 : vector<2x32xf32>
    %42 = math.tanh %41 : vector<2x32xf32>
    %43 = arith.mulf %37, %42 : vector<2x32xf32>
    %44 = tpu.concatenate %41, %43 in 1 : vector<2x32xf32>, vector<2x32xf32> -> vector<2x64xf32>
    %45 = arith.truncf %44 : vector<2x64xf32> to vector<2x64xbf16>
    %c0_17 = arith.constant 0 : index
    %c0_18 = arith.constant 0 : index
    %46 = vector.load %arg8[%c0_17, %c0_18] : memref<2x64xbf16, #tpu.memory_space<vmem>>, vector<2x64xbf16>
    tpu.vector_store %arg8[%c0_17, %c0_18], %45 {strides = array<i32>} : memref<2x64xbf16, #tpu.memory_space<vmem>>, vector<2x64xbf16>,
    return
  }
  func.func @transform_0(%arg0: i32) -> (i32, i32) {
    %c0_i32 = arith.constant 0 : i32
    %c0_i32_0 = arith.constant 0 : i32
    return %arg0, %c0_i32 : i32, i32
  }
  func.func @transform_1(%arg0: i32) -> (i32, i32) {
    %c0_i32 = arith.constant 0 : i32
    %c0_i32_0 = arith.constant 0 : i32
    return %arg0, %c0_i32 : i32, i32
  }
  func.func @transform_2(%arg0: i32) -> (i32, i32) {
    %c0_i32 = arith.constant 0 : i32
    %c0_i32_0 = arith.constant 0 : i32
    return %arg0, %c0_i32 : i32, i32
  }
  func.func @transform_3(%arg0: i32) -> (i32, i32) {
    %c0_i32 = arith.constant 0 : i32
    %c0_i32_0 = arith.constant 0 : i32
    return %arg0, %c0_i32 : i32, i32
  }
  func.func @transform_4(%arg0: i32) -> (i32, i32) {
    %c0_i32 = arith.constant 0 : i32
    %c0_i32_0 = arith.constant 0 : i32
    %c0_i32_1 = arith.constant 0 : i32
    return %c0_i32, %c0_i32_0 : i32, i32
  }
  func.func @transform_5(%arg0: i32) -> (i32, i32) {
    %c0_i32 = arith.constant 0 : i32
    %c0_i32_0 = arith.constant 0 : i32
    %c0_i32_1 = arith.constant 0 : i32
    return %c0_i32, %c0_i32_0 : i32, i32
  }
  func.func @transform_6(%arg0: i32) -> (i32, i32) {
    %c0_i32 = arith.constant 0 : i32
    %c0_i32_0 = arith.constant 0 : i32
    %c0_i32_1 = arith.constant 0 : i32
    return %c0_i32, %c0_i32_0 : i32, i32
  }
  func.func @transform_7(%arg0: i32) -> (i32, i32) {
    %c0_i32 = arith.constant 0 : i32
    %c0_i32_0 = arith.constant 0 : i32
    return %arg0, %c0_i32 : i32, i32
  }
}

</mosaic_0001>

<bundles_post_ra>
// kernel: _forward_impl.3
= control target key start
LH: loop header
LB: loop body
LE: loop exit
PB: predicated region body
PF: predicated region fallthrough
CT: control target
= control target key end

     0   :  { %s565_s15 = smov 0   ;;  %s602_s0 = inlined_call_operand.vmem [shape: f32[26,16], index: 0, kind: input, shape index: {}]   ;;  %s603_s1 = inlined_call_operand.vmem [shape: f32[16,128], index: 1, kind: input, shape index: {}]   ;;  %s604_s2 = inlined_call_operand.vmem [shape: f32[1,128], index: 2, kind: input, shape index: {}]   ;;  %s605_s3 = inlined_call_operand.vmem [shape: bf16[26,128], index: 3, kind: output, shape index: {0}]   ;;  %s606_s4 = inlined_call_operand.vmem [shape: bf16[26,64], index: 4, kind: output, shape index: {1}]  }
   0x1 LB: > { %s458_s16 = sadd.s32 4294967295, %s536_s15   ;;  %p462_p0 = scmp.ge.s32.totalorder %s536_s15, 1  ;;  %s536_s15 = sphi %s565_s15, %s15_s15  }
   0x2   : > { %p166_p1 = scmp.lt.s32.totalorder %s536_s15, 3 }
   0x4   : > { %p167_p2 = pnand %p462_p0, %p166_p1 }
   0x5   : > { %v217_v0 = vld [vmem:[%s603_s1] sm:$0xff] (!%p167_p2)  ;;  %v218_v1 = vld [vmem:[%s603_s1 + $0x8] sm:$0xff] (!%p167_p2)  ;;  %s463_s21 = sshll.u32 (!%p167_p2), %s458_s16, 1  ;;  %vm226_vm0 = vcmask (!%p167_p2), 130048   ;;  %s538_s6 = smov (!%p167_p2), 64   ;;  %vm354_vm1 = vcmask (!%p167_p2), 261120  }
   0x6   : > { %170 = sbr.rel (%p167_p2) target bundleno = 497 (0x1f1), region = 32  ;;  %v500_v2 = vpack.c.bf16 (!%p167_p2), %v218_v1, %v217_v0  ;;  %p198_p3 = scmp.lt.s32.totalorder (!%p167_p2), %s463_s21, 3  ;;  %v469_v5 = vld [vmem:[%s604_s2] ss:$0 sm:$0xff] (!%p167_p2)  ;;  %vm365_vm2 = vcmask (!%p167_p2), 519168  }
   0x7   : > { %s539_s7 = smov (!%p167_p2), 32  }
   0x8   : > { %501 = vmatprep.subr.bf16.mxu0 (!%p167_p2), %v500_v2 }
   0x9   : > { %503 = vmatpush3.bf16.msra.mxu0 (!%p167_p2), %v500_v2 }
   0xd   : > { %s608_s21 = smov (!%p198_p3, %s463_s21), 3 }
   0xe   : > { %s464_s22 = sshll.u32 %s608_s21, 3  ;;  %s466_s28 = sshll.u32 %s608_s21, 2 }
   0xf   : > { %s201_s25 = scalar_lea.vmem %s602_s0, %s464_s22  ;;  %s207_s5 = scalar_lea.vmem %s605_s3, %s466_s28 }
  0x10   : > { %v215_v3 = vld [vmem:[%s201_s25] sm:$0xff]  ;;  %v216_v4 = vld [vmem:[%s201_s25 + $0x8] sm:$0xff]  ;;  %s213_s10 = scalar_lea.vmem %s606_s4, %s466_s28 }
  0x11   : > { %497 = vmatprep.mubr.msk.f32.mxu0 %vm226_vm0, %v215_v3 }
  0x12   : > { %498 = vmatmul.mubr.msk.f32.vlgmr.msra.gmra.mrb[0].mxu0 %vm226_vm0, %v216_v4 }
  0xe5   : > { %v499_v6 = vpop.f32.mrb[0].mxu0 }
  0xe6   : > { %v305_v7 = vadd.f32 %v499_v6, %v469_v5  ;;  %v299_v8 = vpop.f32.mrb[1].mxu0 }
  0xe7   : > { %v300_v9 = vadd.f32 %v469_v5, %v299_v8 }
  0xe8   : > { %v475_v14 = vmul.f32 -1.442695, %v305_v7 }
  0xe9   : > { %v487_v10 = vpack.c.bf16 %v305_v7, %v300_v9  ;;  %514 = vtanh.f32 %v300_v9  ;;  %v474_v13 = vmul.f32 -1.442695, %v300_v9 }
  0xea   : > { %516 = vtanh.f32 %v305_v7 }
  0xeb   : > { %488 = vst [vmem:[%s207_s5] sm:$0xff] %v487_v10   ;;  %518 = vpow2.f32 %v474_v13 }
  0xec   : > { %520 = vpow2.f32 %v475_v14 }
  0xf3   : > { %v515_v11 = vpop.eup %514 }
  0xf4   : > { %334 = vrot.lane.b32.xlu0 %v515_v11, %s538_s6  ;;  %v517_v12 = vpop.eup %516 }
  0xf5   : > { %v519_v15 = vpop.eup %518 }
  0xf6   : > { %v324_v16 = vadd.f32 1.0, %v519_v15  ;;  %v521_v17 = vpop.eup %520 }
  0xf7   : > { %v325_v18 = vadd.f32 1.0, %v521_v17 }
  0xf8   : > { %336 = vrot.lane.b32.xlu0 %v517_v12, %s538_s6  ;;  %522 = vrcp.f32 %v324_v16 }
  0xf9   : > { %524 = vrcp.f32 %v325_v18 }
 0x102   : > { %v523_v19 = vpop.eup %522 }
 0x103   : > { %v525_v22 = vpop.eup %524 }
 0x166   : > { %v335_v20 = vpop.permute.xlu0 %334 }
 0x167   : > { %v340_v21 = vmul.f32 %v523_v19, %v335_v20 }
 0x169   : > { %526 = vtanh.f32 %v340_v21 }
 0x16a   : > { %v337_v23 = vpop.permute.xlu0 %336 }
 0x16b   : > { %v341_v24 = vmul.f32 %v525_v22, %v337_v23 }
 0x16d   : > { %528 = vtanh.f32 %v341_v24 }
 0x173   : > { %v527_v25 = vpop.eup %526 }
 0x174   : > { %346 = vrot.lane.b32.xlu1 %v527_v25, %s539_s7 }
 0x177   : > { %v529_v26 = vpop.eup %528 }
 0x178   : > { %348 = vrot.lane.b32.xlu1 %v529_v26, %s539_s7 }
 0x1e6   : > { %v347_v27 = vpop.permute.xlu1 %346 }
 0x1e7   : > { %v352_v28 = vmul.f32 %v523_v19, %v347_v27 }
 0x1e9   : > { %v355_v29 = vsel %vm354_vm1, %v340_v21, %v352_v28 }
 0x1ea   : > { %v482_v30 = vpack.c.bf16 %v355_v29, %v355_v29  ;;  %v349_v31 = vpop.permute.xlu1 %348 }
 0x1eb   : > { %v353_v32 = vmul.f32 %v525_v22, %v349_v31 }
 0x1ec   : > { %366 = vst.msk [vmem:[%s213_s10] sm:$0xf] %vm365_vm2, %v482_v30 }
 0x1ed   : > { %v356_v33 = vsel %vm354_vm1, %v341_v24, %v353_v32 }
 0x1ee   : > { %v483_v34 = vpack.c.bf16 %v356_v33, %v356_v33 }
 0x1f0   : > { %367 = vst.msk [vmem:[%s213_s10 + $0x4] sm:$0xf] %vm365_vm2, %v483_v34 }
 0x1f1 PF: > { %s15_s15 = sadd.s32 1, %s536_s15  }
 0x1f2   : > { %p12_p4 = scmp.ge.s32.totalorder %s15_s15, 4  }
 0x1f4   :  { %14 = sbr.rel (!%p12_p4) target bundleno = 1 (0x1), region = 74 }

// kernel: _forward_impl.4
= control target key start
LH: loop header
LB: loop body
LE: loop exit
PB: predicated region body
PF: predicated region fallthrough
CT: control target
= control target key end

     0   :  { %v392_v1 = vmov 0   ;;  %s393_s19 = smov 32   ;;  %vm100_vm0 = vcmask 785408   ;;  %s394_s29 = smov 64   ;;  %v395_v21 = vmov 0.0   ;;  %vm396_vm1 = vmmov 0   ;;  %s518_s4 = inlined_call_operand.vmem [shape: bf16[96,192], index: 4, kind: input, shape index: {}]   ;;  %s519_s1 = inlined_call_operand.vmem [shape: bf16[6,32], index: 1, kind: input, shape index: {}]   ;;  %s520_s2 = inlined_call_operand.vmem [shape: bf16[6,96], index: 2, kind: input, shape index: {}]   ;;  %s521_s0 = inlined_call_operand.vmem [shape: bf16[6,96], index: 0, kind: input, shape index: {}]   ;;  %s522_s5 = inlined_call_operand.vmem [shape: bf16[96,32], index: 5, kind: input, shape index: {}]   ;;  %s523_s3 = inlined_call_operand.vmem [shape: bf16[6,96], index: 3, kind: input, shape index: {}]   ;;  %s524_s6 = inlined_call_operand.vmem [shape: f32[1,32], index: 6, kind: input, shape index: {}]   ;;  %s525_s7 = inlined_call_operand.vmem [shape: bf16[6,64], index: 7, kind: output, shape index: {}]  }
   0x1   :  { %v356_v0 = vld [vmem:[%s518_s4 + $0x4] ss:$8 sps:$4 sm:$0xff]   ;;  %136 = vmatprep.mubr.bf16.mxu0 %v392_v1  ;;  %v358_v2 = vld [vmem:[%s518_s4] ss:$8 sps:$4 sm:$0xff]   ;;  %v359_v3 = vld [vmem:[%s518_s4 + $0x14] ss:$8 sps:$4 sm:$0xff]   ;;  %335 = vmatprep.subr.bf16.mxu1 %v395_v21 }
   0x2   :  { %104 = vmatprep.subr.bf16.mxu0 %v356_v0  ;;  %v361_v4 = vld [vmem:[%s518_s4 + $0x10] ss:$8 sps:$4 sm:$0xff]   ;;  %v362_v5 = vld [vmem:[%s518_s4 + $0x24] ss:$8 sps:$4 sm:$0xff]   ;;  %v364_v6 = vld [vmem:[%s518_s4 + $0x20] ss:$8 sps:$4 sm:$0xff]   ;;  %347 = vmatprep.mubr.msk.bf16.mxu1 %vm396_vm1, %v395_v21 }
   0x3   :  { %105 = vmatpush1.bf16.msra.mxu0 %v358_v2  ;;  %v365_v7 = vld [vmem:[%s518_s4 + $0x34] ss:$8 sps:$4 sm:$0xff]   ;;  %v148_v8 = vld [vmem:[%s519_s1] sm:$0x7]  ;;  %v367_v10 = vld [vmem:[%s518_s4 + $0x30] ss:$8 sps:$4 sm:$0xff]  }
   0x4   :  { %106 = vmatprep.subr.bf16.mxu0 %v359_v3  ;;  %v149_v9 = vunpack.c.l.bf16 %v148_v8  ;;  %v368_v11 = vld [vmem:[%s518_s4 + $0x44] ss:$8 sps:$4 sm:$0xff]   ;;  %v370_v12 = vld [vmem:[%s518_s4 + $0x40] ss:$8 sps:$4 sm:$0xff]   ;;  %v371_v13 = vld [vmem:[%s518_s4 + $0x54] ss:$8 sps:$4 sm:$0xff]  }
   0x5   :  { %v373_v14 = vld [vmem:[%s518_s4 + $0x50] ss:$8 sps:$4 sm:$0xff]   ;;  %v27_v15 = vld [vmem:[%s520_s2] sm:$0x7]  ;;  %v375_v25 = vld [vmem:[%s522_s5 + $0x8] sm:$0xff]   ;;  %vm157_vm2 = vcmask 261120  }
   0x6   :  { %151 = vrot.lane.b32.xlu0 %v149_v9, %s393_s19  ;;  %v145_v16 = vld [vmem:[%s521_s0] sm:$0x7]  ;;  %v376_v26 = vld [vmem:[%s522_s5 + $0x10] sm:$0xff]   ;;  %v377_v27 = vld [vmem:[%s522_s5 + $0x18] sm:$0xff]   ;;  %vm159_vm3 = vcmask 523264   ;;  %vm299_vm4 = vcmask 518144  }
   0x7   :  { %107 = vmatpush1.bf16.msra.mxu0 %v361_v4  ;;  %v146_v17 = vunpack.c.l.bf16 %v145_v16  ;;  %v374_v22 = vld [vmem:[%s522_s5] sm:$0xff]   ;;  %v379_v30 = vld [vmem:[%s522_s5 + $0x28] sm:$0xff]  }
   0x8   :  { %108 = vmatprep.subr.bf16.mxu0 %v362_v5  ;;  %336 = vmatpush3.bf16.msra.mxu1 %v374_v22  ;;  %v378_v29 = vld [vmem:[%s522_s5 + $0x20] sm:$0xff]  }
   0x9   :  { %337 = vmatprep.subr.bf16.mxu1 %v395_v21  ;;  %v176_v42 = vld [vmem:[%s523_s3] sm:$0x7] }
   0xa   :  { %154 = vrot.lane.b32.xlu0 %v149_v9, %s394_s29  ;;  %v177_v43 = vunpack.c.l.bf16 %v176_v42  ;;  %v319_v51 = vld [vmem:[%s524_s6] ss:$0 sm:$0xff] }
   0xb   :  { %109 = vmatpush1.bf16.msra.mxu0 %v364_v6 }
   0xc   :  { %110 = vmatprep.subr.bf16.mxu0 %v365_v7  ;;  %338 = vmatpush3.bf16.msra.mxu1 %v375_v25 }
   0xd   :  { %339 = vmatprep.subr.bf16.mxu1 %v395_v21 }
   0xf   :  { %111 = vmatpush1.bf16.msra.mxu0 %v367_v10 }
  0x10   :  { %112 = vmatprep.subr.bf16.mxu0 %v368_v11  ;;  %340 = vmatpush3.bf16.msra.mxu1 %v376_v26 }
  0x11   :  { %341 = vmatprep.subr.bf16.mxu1 %v395_v21 }
  0x13   :  { %113 = vmatpush1.bf16.msra.mxu0 %v370_v12 }
  0x14   :  { %114 = vmatprep.subr.bf16.mxu0 %v371_v13  ;;  %342 = vmatpush3.bf16.msra.mxu1 %v377_v27 }
  0x15   :  { %343 = vmatprep.subr.bf16.mxu1 %v395_v21 }
  0x17   :  { %115 = vmatpush1.bf16.msra.mxu0 %v373_v14 }
  0x18   :  { %344 = vmatpush3.bf16.msra.mxu1 %v378_v29 }
  0x19   :  { %345 = vmatprep.subr.bf16.mxu1 %v395_v21 }
  0x1a   :  { %317 = vmatmul.mubr.msk.bf16.vlgmr.msra.gmra.mrb[0].mxu0 %vm100_vm0, %v27_v15 }
  0x1c   :  { %346 = vmatpush3.bf16.msra.mxu1 %v379_v30 }
  0x78   :  { %v152_v31 = vpop.permute.xlu0 %151 }
  0x79   :  { %v158_v33 = vsel %vm157_vm2, %v149_v9, %v152_v31 }
  0x7c   :  { %v155_v34 = vpop.permute.xlu0 %154 }
  0x7d   :  { %v160_v36 = vsel %vm159_vm3, %v158_v33, %v155_v34 }
  0xed   :  { %v138_v18 = vpop.f32.mrb[0].mxu0 }
  0xee   :  { %v147_v19 = vadd.f32 %v146_v17, %v138_v18  ;;  %163 = vrot.lane.b32.xlu1 %v138_v18, %s393_s19  ;;  %v140_v20 = vpop.f32.mrb[1].mxu0 }
  0xef   :  { %v142_v23 = vpop.f32.mrb[2].mxu0 }
  0xf0   :  { %380 = vtanh.f32 %v147_v19  ;;  %v143_v24 = vpop.f32.mrb[3].mxu0  ;;  %v327_v47 = vmul.f32 -1.442695, %v147_v19 }
  0xf2   :  { %165 = vrot.lane.b32.xlu1 %v140_v20, %s393_s19 }
  0xfa   :  { %v381_v28 = vpop.eup %380 }
  0xfb   :  { %286 = vrot.lane.b32.xlu0 %v381_v28, %s394_s29 }
 0x160   :  { %v164_v32 = vpop.permute.xlu1 %163 }
 0x164   :  { %v166_v35 = vpop.permute.xlu1 %165 }
 0x165   :  { %v167_v37 = vsel %vm157_vm2, %v164_v32, %v166_v35 }
 0x166   :  { %v169_v38 = vadd.f32 %v167_v37, %v160_v36 }
 0x168   :  { %v318_v39 = vmul.f32 -1.442695, %v169_v38 }
 0x16a   :  { %382 = vpow2.f32 %v318_v39 }
 0x16d   :  { %v287_v50 = vpop.permute.xlu0 %286 }
 0x174   :  { %v383_v40 = vpop.eup %382 }
 0x175   :  { %v173_v41 = vadd.f32 1.0, %v383_v40 }
 0x177   :  { %384 = vrcp.f32 %v173_v41 }
 0x178   :  { %386 = vpow2.f32 %v327_v47 }
 0x181   :  { %v385_v44 = vpop.eup %384 }
 0x182   :  { %v178_v45 = vmul.f32 %v385_v44, %v177_v43  ;;  %v387_v48 = vpop.eup %386 }
 0x183   :  { %v281_v49 = vadd.f32 1.0, %v387_v48 }
 0x184   :  { %v179_v46 = vpack.c.bf16 %v178_v45, %v178_v45 }
 0x185   :  { %388 = vrcp.f32 %v281_v49 }
 0x186   :  { %348 = vmatmul.mubr.msk.bf16.vlgmr.msra.gmra.mrb[0].mxu1 %vm100_vm0, %v179_v46 }
 0x18f   :  { %v389_v52 = vpop.eup %388 }
 0x190   :  { %v289_v54 = vmul.f32 %v389_v52, %v287_v50 }
 0x259   :  { %v272_v53 = vpop.f32.mrb[0].mxu1 }
 0x25a   :  { %v273_v55 = vadd.f32 %v319_v51, %v272_v53  ;;  %v349_v56 = vpop.f32.mrb[1].mxu1 }
 0x25b   :  { %v275_v57 = vpop.f32.mrb[2].mxu1 }
 0x25c   :  { %v290_v58 = vadd.f32 %v289_v54, %v273_v55  ;;  %v350_v59 = vpop.f32.mrb[3].mxu1 }
 0x25e   :  { %390 = vtanh.f32 %v290_v58 }
 0x268   :  { %v391_v60 = vpop.eup %390 }
 0x269   :  { %293 = vrot.lane.b32.xlu1 %v391_v60, %s393_s19 }
 0x2db   :  { %v294_v61 = vpop.permute.xlu1 %293 }
 0x2dc   :  { %v296_v62 = vmul.f32 %v389_v52, %v294_v61 }
 0x2de   :  { %v297_v63 = vsel %vm157_vm2, %v290_v58, %v296_v62 }
 0x2df   :  { %v298_v0 = vpack.c.bf16 %v297_v63, %v297_v63 }
 0x2e1   :  { %300 = vst.msk [vmem:[%s525_s7] sm:$0x7] %vm299_vm4, %v298_v0 }

// kernel: _forward_impl.5
= control target key start
LH: loop header
LB: loop body
LE: loop exit
PB: predicated region body
PF: predicated region fallthrough
CT: control target
= control target key end

     0   :  { %v154_v0 = vlaneseq  ;;  %v400_v2 = vmov 0   ;;  %v401_v3 = vmov 1983009808   ;;  %s402_s21 = smov 32   ;;  %vm100_vm0 = vcmask 785408   ;;  %s403_s29 = smov 64   ;;  %s530_s4 = inlined_call_operand.vmem [shape: bf16[96,192], index: 4, kind: input, shape index: {}]   ;;  %s531_s1 = inlined_call_operand.vmem [shape: bf16[2,32], index: 1, kind: input, shape index: {}]   ;;  %s532_s2 = inlined_call_operand.vmem [shape: bf16[2,96], index: 2, kind: input, shape index: {}]   ;;  %s533_s0 = inlined_call_operand.vmem [shape: bf16[2,96], index: 0, kind: input, shape index: {}]   ;;  %s534_s5 = inlined_call_operand.vmem [shape: bf16[96,32], index: 5, kind: input, shape index: {}]   ;;  %s535_s3 = inlined_call_operand.vmem [shape: bf16[2,96], index: 3, kind: input, shape index: {}]   ;;  %s536_s6 = inlined_call_operand.vmem [shape: f32[1,32], index: 6, kind: input, shape index: {}]   ;;  %s537_s7 = inlined_call_operand.vmem [shape: bf16[2,64], index: 7, kind: output, shape index: {}]  }
   0x1   :  { %v364_v1 = vld [vmem:[%s530_s4 + $0x4] ss:$8 sps:$4 sm:$0xff]   ;;  %136 = vmatprep.mubr.bf16.mxu0 %v400_v2  ;;  %v152_v4 = vunpack.c.l.s4 %v401_v3  ;;  %v366_v5 = vld [vmem:[%s530_s4] ss:$8 sps:$4 sm:$0xff]   ;;  %v367_v6 = vld [vmem:[%s530_s4 + $0x14] ss:$8 sps:$4 sm:$0xff]  }
   0x2   :  { %104 = vmatprep.subr.bf16.mxu0 %v364_v1  ;;  %v369_v7 = vld [vmem:[%s530_s4 + $0x10] ss:$8 sps:$4 sm:$0xff]   ;;  %v155_v9 = vshrl.u32 %v154_v0, 7  ;;  %v370_v10 = vld [vmem:[%s530_s4 + $0x24] ss:$8 sps:$4 sm:$0xff]   ;;  %v404_v28 = vmov 0.0  }
   0x3   :  { %105 = vmatpush1.bf16.msra.mxu0 %v366_v5  ;;  %v153_v8 = vunpack.c.0.s8 %v152_v4  ;;  %v372_v11 = vld [vmem:[%s530_s4 + $0x20] ss:$8 sps:$4 sm:$0xff]   ;;  %v373_v13 = vld [vmem:[%s530_s4 + $0x34] ss:$8 sps:$4 sm:$0xff]   ;;  %v375_v16 = vld [vmem:[%s530_s4 + $0x30] ss:$8 sps:$4 sm:$0xff]   ;;  %342 = vmatprep.subr.bf16.mxu1 %v404_v28 }
   0x4   :  { %106 = vmatprep.subr.bf16.mxu0 %v367_v6  ;;  %v470_v14 = vld [vmem:[%s531_s1] sm:$0x1]  ;;  %v376_v18 = vld [vmem:[%s530_s4 + $0x44] ss:$8 sps:$4 sm:$0xff]   ;;  %v379_v20 = vld [vmem:[%s530_s4 + $0x54] ss:$8 sps:$4 sm:$0xff]  }
   0x5   :  { %v156_v12 = vsub.s32 %v153_v8, %v155_v9  ;;  %v149_v15 = vunpack.c.l.bf16 %v470_v14  ;;  %v378_v19 = vld [vmem:[%s530_s4 + $0x40] ss:$8 sps:$4 sm:$0xff]   ;;  %v381_v21 = vld [vmem:[%s530_s4 + $0x50] ss:$8 sps:$4 sm:$0xff]   ;;  %vm405_vm1 = vmmov 0   ;;  %vm164_vm2 = vcmask 261120  }
   0x6   :  { %v27_v22 = vld [vmem:[%s532_s2] sm:$0x1]  ;;  %v383_v32 = vld [vmem:[%s534_s5 + $0x8] sm:$0xff]   ;;  %v384_v33 = vld [vmem:[%s534_s5 + $0x10] sm:$0xff]   ;;  %354 = vmatprep.mubr.msk.bf16.mxu1 %vm405_vm1, %v404_v28  ;;  %vm166_vm3 = vcmask 523264   ;;  %vm306_vm4 = vcmask 516096  }
   0x7   :  { %107 = vmatpush1.bf16.msra.mxu0 %v369_v7  ;;  %v157_v17 = vrot.slane %v149_v15, %v156_v12  ;;  %v145_v23 = vld [vmem:[%s533_s0] sm:$0x1]  ;;  %v385_v34 = vld [vmem:[%s534_s5 + $0x18] sm:$0xff]   ;;  %v387_v37 = vld [vmem:[%s534_s5 + $0x28] sm:$0xff]  }
   0x8   :  { %108 = vmatprep.subr.bf16.mxu0 %v370_v10  ;;  %v146_v24 = vunpack.c.l.bf16 %v145_v23  ;;  %v382_v29 = vld [vmem:[%s534_s5] sm:$0xff]  }
   0x9   :  { %158 = vrot.lane.b32.xlu0 %v157_v17, %s402_s21  ;;  %343 = vmatpush3.bf16.msra.mxu1 %v382_v29  ;;  %v386_v36 = vld [vmem:[%s534_s5 + $0x20] sm:$0xff]  }
   0xa   :  { %344 = vmatprep.subr.bf16.mxu1 %v404_v28  ;;  %v183_v49 = vld [vmem:[%s535_s3] sm:$0x1] }
   0xb   :  { %109 = vmatpush1.bf16.msra.mxu0 %v372_v11  ;;  %v184_v50 = vunpack.c.l.bf16 %v183_v49  ;;  %v326_v58 = vld [vmem:[%s536_s6] ss:$0 sm:$0xff] }
   0xc   :  { %110 = vmatprep.subr.bf16.mxu0 %v373_v13 }
   0xd   :  { %161 = vrot.lane.b32.xlu0 %v157_v17, %s403_s29  ;;  %345 = vmatpush3.bf16.msra.mxu1 %v383_v32 }
   0xe   :  { %346 = vmatprep.subr.bf16.mxu1 %v404_v28 }
   0xf   :  { %111 = vmatpush1.bf16.msra.mxu0 %v375_v16 }
  0x10   :  { %112 = vmatprep.subr.bf16.mxu0 %v376_v18 }
  0x11   :  { %347 = vmatpush3.bf16.msra.mxu1 %v384_v33 }
  0x12   :  { %348 = vmatprep.subr.bf16.mxu1 %v404_v28 }
  0x13   :  { %113 = vmatpush1.bf16.msra.mxu0 %v378_v19 }
  0x14   :  { %114 = vmatprep.subr.bf16.mxu0 %v379_v20 }
  0x15   :  { %349 = vmatpush3.bf16.msra.mxu1 %v385_v34 }
  0x16   :  { %350 = vmatprep.subr.bf16.mxu1 %v404_v28 }
  0x17   :  { %115 = vmatpush1.bf16.msra.mxu0 %v381_v21 }
  0x19   :  { %351 = vmatpush3.bf16.msra.mxu1 %v386_v36 }
  0x1a   :  { %324 = vmatmul.mubr.msk.bf16.vlgmr.msra.gmra.mrb[0].mxu0 %vm100_vm0, %v27_v22  ;;  %352 = vmatprep.subr.bf16.mxu1 %v404_v28 }
  0x1d   :  { %353 = vmatpush3.bf16.msra.mxu1 %v387_v37 }
  0x7b   :  { %v159_v38 = vpop.permute.xlu0 %158 }
  0x7c   :  { %v165_v40 = vsel %vm164_vm2, %v149_v15, %v159_v38 }
  0x7f   :  { %v162_v41 = vpop.permute.xlu0 %161 }
  0x80   :  { %v167_v43 = vsel %vm166_vm3, %v165_v40, %v162_v41 }
  0xed   :  { %v138_v25 = vpop.f32.mrb[0].mxu0 }
  0xee   :  { %v147_v26 = vadd.f32 %v146_v24, %v138_v25  ;;  %170 = vrot.lane.b32.xlu1 %v138_v25, %s402_s21  ;;  %v140_v27 = vpop.f32.mrb[1].mxu0 }
  0xef   :  { %v142_v30 = vpop.f32.mrb[2].mxu0 }
  0xf0   :  { %388 = vtanh.f32 %v147_v26  ;;  %v143_v31 = vpop.f32.mrb[3].mxu0  ;;  %v334_v54 = vmul.f32 -1.442695, %v147_v26 }
  0xf2   :  { %172 = vrot.lane.b32.xlu1 %v140_v27, %s402_s21 }
  0xfa   :  { %v389_v35 = vpop.eup %388 }
  0xfb   :  { %293 = vrot.lane.b32.xlu0 %v389_v35, %s403_s29 }
 0x160   :  { %v171_v39 = vpop.permute.xlu1 %170 }
 0x164   :  { %v173_v42 = vpop.permute.xlu1 %172 }
 0x165   :  { %v174_v44 = vsel %vm164_vm2, %v171_v39, %v173_v42 }
 0x166   :  { %v176_v45 = vadd.f32 %v174_v44, %v167_v43 }
 0x168   :  { %v325_v46 = vmul.f32 -1.442695, %v176_v45 }
 0x16a   :  { %390 = vpow2.f32 %v325_v46 }
 0x16d   :  { %v294_v57 = vpop.permute.xlu0 %293 }
 0x174   :  { %v391_v47 = vpop.eup %390 }
 0x175   :  { %v180_v48 = vadd.f32 1.0, %v391_v47 }
 0x177   :  { %392 = vrcp.f32 %v180_v48 }
 0x178   :  { %394 = vpow2.f32 %v334_v54 }
 0x181   :  { %v393_v51 = vpop.eup %392 }
 0x182   :  { %v185_v52 = vmul.f32 %v393_v51, %v184_v50  ;;  %v395_v55 = vpop.eup %394 }
 0x183   :  { %v288_v56 = vadd.f32 1.0, %v395_v55 }
 0x184   :  { %v186_v53 = vpack.c.bf16 %v185_v52, %v185_v52 }
 0x185   :  { %396 = vrcp.f32 %v288_v56 }
 0x186   :  { %355 = vmatmul.mubr.msk.bf16.vlgmr.msra.gmra.mrb[0].mxu1 %vm100_vm0, %v186_v53 }
 0x18f   :  { %v397_v59 = vpop.eup %396 }
 0x190   :  { %v296_v61 = vmul.f32 %v397_v59, %v294_v57 }
 0x259   :  { %v279_v60 = vpop.f32.mrb[0].mxu1 }
 0x25a   :  { %v280_v62 = vadd.f32 %v326_v58, %v279_v60  ;;  %v356_v63 = vpop.f32.mrb[1].mxu1 }
 0x25b   :  { %v282_v0 = vpop.f32.mrb[2].mxu1 }
 0x25c   :  { %v297_v1 = vadd.f32 %v296_v61, %v280_v62  ;;  %v357_v2 = vpop.f32.mrb[3].mxu1 }
 0x25e   :  { %398 = vtanh.f32 %v297_v1 }
 0x268   :  { %v399_v3 = vpop.eup %398 }
 0x269   :  { %300 = vrot.lane.b32.xlu1 %v399_v3, %s402_s21 }
 0x2db   :  { %v301_v4 = vpop.permute.xlu1 %300 }
 0x2dc   :  { %v303_v5 = vmul.f32 %v397_v59, %v301_v4 }
 0x2de   :  { %v304_v6 = vsel %vm164_vm2, %v297_v1, %v303_v5 }
 0x2df   :  { %v305_v7 = vpack.c.bf16 %v304_v6, %v304_v6 }
 0x2e1   :  { %307 = vst.msk [vmem:[%s537_s7] sm:$0x1] %vm306_vm4, %v305_v7 }

</bundles_post_ra>
